<compile_context>
chip_gen: v7x
topology: tpu7x:2x2x1
jax: 0.10.0
libtpu: 0.0.40
codegen_flags: <defaults>
</compile_context>

<pallas_src>
import functools
import math

import jax
import jax.numpy as jnp
from jax.experimental import pallas as pl
from jax.experimental.pallas import tpu as pltpu


# --------------------------------------------------------------------------- #
# Kernel body: o = x * scale + pe   (pe is a (1, tc) row, broadcast over rows)
# --------------------------------------------------------------------------- #
def _scale_add_kernel(x_ref, pe_ref, o_ref, *, scale: float, compute_dtype):
    x = x_ref[...].astype(compute_dtype)
    pe = pe_ref[...].astype(compute_dtype)
    o_ref[...] = (x * scale + pe).astype(o_ref.dtype)


# --------------------------------------------------------------------------- #
# Host-side helpers
# --------------------------------------------------------------------------- #
def make_positional_encoding(max_length: int, hidden_size: int,
                             dtype=jnp.float32):
    """Matches the torch buffer: sin on even hidden indices, cos on odd."""
    pos = jnp.arange(max_length, dtype=jnp.float32)[:, None]
    div_term = jnp.exp(
        jnp.arange(0, hidden_size, 2, dtype=jnp.float32)
        * (-(math.log(10000.0) / hidden_size)))
    ang = pos * div_term[None, :]                             # (L, H//2)
    pe = jnp.stack([jnp.sin(ang), jnp.cos(ang)], axis=-1)     # (L, H//2, 2)
    return pe.reshape(max_length, hidden_size).astype(dtype)


def _device_kind() -> str:
    try:
        return jax.devices()[0].device_kind.lower()
    except Exception:
        return ""


def _num_tensorcores() -> int:
    # v7x exposes 2 TensorCores per chip; v5e/v6e have 1.
    return 2 if "v7" in _device_kind() else 1


def _compute_dtype(dtype):
    """bf16 compute is native on v6e/v7x; upcast to f32 only on v5e."""
    dtype = jnp.dtype(dtype)
    if dtype == jnp.dtype(jnp.float32):
        return jnp.float32
    kind = _device_kind()
    if "v5" in kind and ("lite" in kind or "5e" in kind):
        return jnp.float32
    return dtype


def _largest_divisor_multiple_of(n: int, base: int, cap: int) -> int:
    """Largest multiple of `base` dividing n with value <= cap (0 if none)."""
    best, d = 0, base
    limit = min(n, cap)
    while d <= limit:
        if n % d == 0:
            best = d
        d += base
    return best


def _scale_broadcast_add(x2d, pe2d, scale: float):
    """x2d: (rows, cols); pe2d: (1, cols).  Returns x2d*scale + pe2d."""
    rows, cols = x2d.shape
    dtype = x2d.dtype
    itemsize = jnp.dtype(dtype).itemsize
    pack = {4: 8, 2: 16, 1: 32}.get(itemsize, 8)     # sublane packing per dtype
    target_block_bytes = 2 << 20                      # ~2 MiB per x block

    # Row tile: multiple of the sublane pack when possible, capped at 128 rows;
    # otherwise the full extent (always legal).
    if rows % pack == 0:
        tr = _largest_divisor_multiple_of(rows, pack, cap=128) or rows
    else:
        tr = rows

    # Column tile: budget the whole (tr, tc) block, not just the lane axis.
    if cols % 128 == 0:
        max_cols = max(128, target_block_bytes // (tr * itemsize))
        tc = _largest_divisor_multiple_of(cols, 128, cap=max_cols) or 128
    else:
        tc = cols                                     # full extent is legal

    grid_c, grid_r = cols // tc, rows // tr

    # Megacore: if the grid collapses to a single step, split one axis so the
    # second TensorCore (v7x) gets work.  Single-TC chips skip this.
    if grid_c * grid_r == 1 and _num_tensorcores() > 1:
        if cols % 256 == 0:
            tc, grid_c = cols // 2, 2
        elif rows % (2 * pack) == 0:
            tr, grid_r = rows // 2, 2

    # VMEM budget: double-buffered x + pe + out blocks plus headroom.
    need = 2 * (tr * tc + tc + tr * tc) * itemsize
    vmem_limit = int(min(max(need + (2 << 20), 16 << 20), 32 << 20))

    kernel = functools.partial(
        _scale_add_kernel, scale=scale, compute_dtype=_compute_dtype(dtype))

    return pl.pallas_call(
        kernel,
        out_shape=jax.ShapeDtypeStruct((rows, cols), dtype),
        grid_spec=pltpu.PrefetchScalarGridSpec(
            num_scalar_prefetch=0,
            # Columns outer, rows inner: the pe block index depends only on the
            # outer axis, so the (1, tc) pe tile stays resident across the
            # inner row loop (fetched once per column strip).
            grid=(grid_c, grid_r),
            in_specs=[
                pl.BlockSpec((tr, tc), lambda j, i: (i, j)),   # embed tile
                pl.BlockSpec((1, tc), lambda j, i: (0, j)),    # pos-enc row
            ],
            out_specs=pl.BlockSpec((tr, tc), lambda j, i: (i, j)),
        ),
        input_output_aliases={0: 0},                  # out reuses embed buffer
        compiler_params=pltpu.CompilerParams(
            dimension_semantics=("parallel", "parallel"),
            vmem_limit_bytes=vmem_limit),
    )(x2d, pe2d)


def positional_encoder(embed, pos_enc, *, step=None):
    """embed: [batch, seq, hidden]; pos_enc: [max_length, hidden]."""
    batch, seq, hidden = embed.shape
    scale = math.sqrt(hidden)
    dtype = embed.dtype

    if step is None:
        # Lane-dense flatten: rows = batch, cols = seq*hidden.
        x2d = embed.reshape(batch, seq * hidden)
        # pe cast to embed dtype (tiny numerical divergence vs torch f32 buffer
        # for bf16 inputs; pe traffic is negligible either way).
        pe2d = pos_enc[:seq].reshape(1, seq * hidden).astype(dtype)
    else:
        # Decoding path: only the single pos_enc row travels to the kernel
        # (no seq-wide broadcast materialized in HBM); rows = batch*seq.
        x2d = embed.reshape(batch * seq, hidden)
        pe2d = pos_enc[step].reshape(1, hidden).astype(dtype)

    out2d = _scale_broadcast_add(x2d, pe2d, scale)

    # TODO(synk): nn.Dropout is treated as identity (inference); train-mode
    # dropout would need pltpu.prng_seed/prng_random_bits inside the kernel.
    return out2d.reshape(batch, seq, hidden)


if __name__ == "__main__":
    # Small BertConfig-like sizes.
    batch, seq = 2, 8
    hidden_size = 32
    max_length = 5000
    # hidden_dropout_prob: dropout is identity at inference time.

    key = jax.random.PRNGKey(0)
    embed = jax.random.normal(key, (batch, seq, hidden_size), jnp.float32)

    pos_enc = make_positional_encoding(max_length, hidden_size)

    scale = math.sqrt(hidden_size)

    # Encoder path (step=None).
    out = positional_encoder(embed, pos_enc)
    jax.block_until_ready(out)
    expected = embed * scale + pos_enc[None, :seq, :]
    assert jnp.allclose(out, expected, atol=1e-5, rtol=1e-5), (
        float(jnp.max(jnp.abs(out - expected))))

    # Decoding path (single position broadcast over the sequence).
    step = 3
    out_step = positional_encoder(embed, pos_enc, step=step)
    jax.block_until_ready(out_step)
    expected_step = embed * scale + pos_enc[step][None, None, :]
    assert jnp.allclose(out_step, expected_step, atol=1e-5, rtol=1e-5), (
        float(jnp.max(jnp.abs(out_step - expected_step))))

    print("KERNEL_OK")
</pallas_src>

<mosaic_0001>
module attributes {stable_mosaic.version = 11 : i64} {
  func.func @_scale_add_kernel(%arg0: i32, %arg1: i32, %arg2: memref<2x256xf32, #tpu.memory_space<vmem>>, %arg3: memref<1x256xf32, #tpu.memory_space<vmem>>, %arg4: memref<2x256xf32, #tpu.memory_space<vmem>>) attributes {dimension_semantics = [#tpu.dimension_semantics<parallel>, #tpu.dimension_semantics<parallel>], iteration_bounds = array<i64: 1, 1>, scalar_prefetch = 0 : i64, scratch_operands = 0 : i64, tpu.core_type = #tpu.core_type<tc>, window_params = [{transform_indices = @transform_0, window_bounds = array<i64: 2, 256>}, {transform_indices = @transform_1, window_bounds = array<i64: 1, 256>}, {transform_indices = @transform_2, window_bounds = array<i64: 2, 256>}]} {
    %c0 = arith.constant 0 : index
    %c0_0 = arith.constant 0 : index
    %0 = vector.load %arg2[%c0, %c0_0] : memref<2x256xf32, #tpu.memory_space<vmem>>, vector<2x256xf32>
    %c0_1 = arith.constant 0 : index
    %c0_2 = arith.constant 0 : index
    %1 = vector.load %arg3[%c0_1, %c0_2] : memref<1x256xf32, #tpu.memory_space<vmem>>, vector<1x256xf32>
    %cst = arith.constant 5.65685415 : f32
    %2 = vector.broadcast %cst : f32 to vector<2x256xf32>
    %3 = arith.mulf %0, %2 : vector<2x256xf32>
    %4 = vector.broadcast %1 : vector<1x256xf32> to vector<2x256xf32>
    %5 = arith.addf %3, %4 : vector<2x256xf32>
    %c0_3 = arith.constant 0 : index
    %c0_4 = arith.constant 0 : index
    %6 = vector.load %arg4[%c0_3, %c0_4] : memref<2x256xf32, #tpu.memory_space<vmem>>, vector<2x256xf32>
    tpu.vector_store %arg4[%c0_3, %c0_4], %5 {strides = array<i32>} : memref<2x256xf32, #tpu.memory_space<vmem>>, vector<2x256xf32>,
    return
  }
  func.func @transform_0(%arg0: i32, %arg1: i32) -> (i32, i32) {
    %c0_i32 = arith.constant 0 : i32
    return %arg1, %arg0 : i32, i32
  }
  func.func @transform_1(%arg0: i32, %arg1: i32) -> (i32, i32) {
    %c0_i32 = arith.constant 0 : i32
    %c0_i32_0 = arith.constant 0 : i32
    return %c0_i32, %arg0 : i32, i32
  }
  func.func @transform_2(%arg0: i32, %arg1: i32) -> (i32, i32) {
    %c0_i32 = arith.constant 0 : i32
    return %arg1, %arg0 : i32, i32
  }
}

</mosaic_0001>

<bundles_post_ra>
// kernel: tpu_custom_call.1
= control target key start
LH: loop header
LB: loop body
LE: loop exit
PB: predicated region body
PF: predicated region fallthrough
CT: control target
= control target key end

     0   :  { %7 = vsyncpa [#allocation3], 0  ;;  %s158_s0 = inlined_call_operand.hbm [shape: f32[2,256], index: 0, kind: input, shape index: {}, may-alias: {0,2}]   ;;  %s159_s1 = inlined_call_operand.vmem [shape: f32[1,256], index: 1, kind: input, shape index: {}]   ;;  %s160_s2 = inlined_call_operand.hbm [shape: f32[2,256], index: 2, kind: output, shape index: {}, may-alias: {0,2}]  }
   0x1   :  { %8 = vsyncpa [#allocation4], 0  ;;  %s113_s9 = smov [#allocation2]   ;;  %s65_s13 = scalar_lea.hbm %s158_s0, 64 }
   0x2   :  { %s15_s10 = sshll.u32 %s113_s9, 4  ;;  %p66_p0 = scmp.ne.s32.totalorder %s158_s0, %s65_s13  ;;  %s16_s10 = int_to_ptr.vmem [resolvable:$true] %s15_s10 }
   0x3   :  { %p69_p1 = scmp.lt.u32.totalorder %s65_s13, %s158_s0 }
   0x5   :  { %p71_p2 = pnand %p69_p1, %p66_p0 }
   0x7   :  { %74 = shalt.err (!%p71_p2)
}
   0x8   :  { %s75_s18 = scalar_lea.vmem %s16_s10, 64  ;;  %p80_p4 = scmp.lt.s32.totalorder %s16_s10, %s16_s10 }
   0x9   :  { %p76_p3 = scmp.ne.s32.totalorder %s16_s10, %s75_s18  ;;  %p81_p5 = scmp.lt.s32.totalorder %s75_s18, %s75_s18 }
   0xb   :  { %p82_p6 = por %p81_p5, %p80_p4 }
   0xd   :  { %p83_p7 = pnand %p82_p6, %p76_p3 }
   0xf   :  { %86 = shalt.err (!%p83_p7)
}
  0x10   :  { %18 = dma.hbm_to_vmem [thread:$0]  %s158_s0, 64, %s16_s10, [#allocation3]  }
  0x11   :  { %109 = dma.done.wait [#allocation3], 64  }
  0x12   :  { %110 = vsyncadd [#allocation3], 4294967232  ;;  %v28_v0 = vlaneseq  ;;  %v114_v1 = vmov 1983009808   ;;  %v24_v7 = vld [vmem:[#allocation2] sm:$0xf] }
  0x13   :  { %v38_v2 = vunpack.c.l.s4 %v114_v1  ;;  %v25_v8 = vld [vmem:[%s159_s1] sm:$0x3]  ;;  %v26_v12 = vmul.f32 5.656854, %v24_v7  ;;  %s115_s0 = smov [#allocation5]  }
  0x14   :  { %v29_v3 = vshrl.u32 %v28_v0, 7  ;;  %s53_s23 = sshll.u32 %s115_s0, 4  ;;  %s54_s23 = int_to_ptr.vmem [resolvable:$true] %s53_s23 }
  0x15   :  { %v39_v6 = vunpack.c.0.s8 %v38_v2  ;;  %s87_s24 = scalar_lea.vmem %s54_s23, 64  ;;  %p92_p9 = scmp.lt.s32.totalorder %s54_s23, %s54_s23 }
  0x16   :  { %v30_v4 = vsub.s32 0, %v29_v3  ;;  %v34_v5 = vsub.s32 1, %v29_v3  ;;  %p88_p8 = scmp.ne.s32.totalorder %s54_s23, %s87_s24  ;;  %p93_p10 = scmp.lt.s32.totalorder %s87_s24, %s87_s24 }
  0x17   :  { %v42_v11 = vsub.s32 %v39_v6, %v29_v3 }
  0x18   :  { %v31_v9 = vrot.slane %v25_v8, %v30_v4  ;;  %v35_v10 = vrot.slane %v25_v8, %v34_v5  ;;  %p94_p11 = por %p93_p10, %p92_p9 }
  0x1a   :  { %v36_v13 = vcombine.low %v31_v9, %v35_v10  ;;  %p95_p12 = pnand %p94_p11, %p88_p8 }
  0x1c   :  { %v43_v14 = vrot.slane %v36_v13, %v42_v11 }
  0x1e   :  { %v45_v15 = vadd.f32 %v43_v14, %v26_v12 }
  0x20   :  { %46 = vst [vmem:[#allocation5] sm:$0xf] %v45_v15 }
  0x21   :  { %98 = shalt.err (!%p95_p12)
}
  0x22   :  { %s99_s26 = scalar_lea.hbm %s160_s2, 64 }
  0x23   :  { %p100_p13 = scmp.ne.s32.totalorder %s160_s2, %s99_s26  ;;  %p103_p0 = scmp.lt.u32.totalorder %s99_s26, %s160_s2 }
  0x25   :  { %p105_p1 = pnand %p103_p0, %p100_p13 }
  0x27   :  { %108 = shalt.err (!%p105_p1)
}
  0x28   :  { %56 = dma.vmem_to_hbm [thread:$0]  %s54_s23, 64, %s160_s2, [#allocation4]  }
  0x29   :  { %111 = dma.done.wait [#allocation4], 64  }
  0x2a   :  { %112 = vsyncadd [#allocation4], 4294967232 }
  0x2b   :  { %60 = vsyncpa [#allocation3], 1 }
  0x2c   :  { %61 = vsyncpa [#allocation4], 1 }

</bundles_post_ra>
